<compile_context>
chip_gen: v6e
topology: v6e:2x2x1
jax: 0.10.0
libtpu: 0.0.40
codegen_flags: <defaults>
</compile_context>

<pallas_src>
import jax
import jax.numpy as jnp
from jax import lax
from jax.experimental import pallas as pl
from jax.experimental.pallas import tpu as pltpu


def _round_up(x, m):
    return ((x + m - 1) // m) * m


def _pick_tile(size, unit, max_tile):
    """Return (padded_size, tile) with minimal padding and tile | padded_size."""
    padded = _round_up(size, unit)
    if padded <= max_tile:
        return padded, padded
    t = (max_tile // unit) * unit
    while t >= unit:
        if padded % t == 0:
            return padded, t
        t -= unit
    return padded, unit  # unreachable: unit always divides padded


# --------------------------------------------------------------------------
# Kernels
# --------------------------------------------------------------------------
def _linear_bias_kernel(x_ref, w_ref, b_ref, o_ref):
    """Whole-K path: one (tm, tn) output tile per grid step, no accumulator."""
    acc = lax.dot_general(
        x_ref[...], w_ref[...],
        dimension_numbers=(((1,), (1,)), ((), ())),   # x @ W.T, W in (C, D)
        preferred_element_type=jnp.float32,
    )
    o_ref[...] = (acc + b_ref[...]).astype(o_ref.dtype)


def _linear_bias_kernel_ktiled_f32out(x_ref, w_ref, b_ref, o_ref):
    """K-tiled path, f32 output: accumulate directly into the resident tile."""
    k = pl.program_id(2)

    @pl.when(k == 0)
    def _():
        o_ref[...] = jnp.zeros_like(o_ref)

    o_ref[...] += lax.dot_general(
        x_ref[...], w_ref[...],
        dimension_numbers=(((1,), (1,)), ((), ())),
        preferred_element_type=jnp.float32,
    )

    @pl.when(k == pl.num_programs(2) - 1)
    def _():
        o_ref[...] += b_ref[...]


def _linear_bias_kernel_ktiled_acc(x_ref, w_ref, b_ref, o_ref, acc_ref):
    """K-tiled path, non-f32 output: f32 VMEM accumulator scratch."""
    k = pl.program_id(2)

    @pl.when(k == 0)
    def _():
        acc_ref[...] = jnp.zeros_like(acc_ref)

    acc_ref[...] += lax.dot_general(
        x_ref[...], w_ref[...],
        dimension_numbers=(((1,), (1,)), ((), ())),
        preferred_element_type=jnp.float32,
    )

    @pl.when(k == pl.num_programs(2) - 1)
    def _():
        o_ref[...] = (acc_ref[...] + b_ref[...]).astype(o_ref.dtype)


# --------------------------------------------------------------------------
# Wrapper
# --------------------------------------------------------------------------
def recon_classifier_forward(x, weight, bias, *, max_fused_k_bytes=20 * 1024 * 1024):
    """y = x @ weight.T + bias  (matches torch.nn.Linear forward).

    x:      (B, D)
    weight: (C, D)  -- PyTorch nn.Linear weight layout, used as-is
    bias:   (C,)
    returns (B, C) in x's dtype
    """
    B, D = x.shape
    C, D_w = weight.shape
    assert D == D_w, "weight must be (num_classes, input_size)"

    out_dtype = x.dtype
    in_itemsize = jnp.dtype(x.dtype).itemsize
    out_itemsize = jnp.dtype(out_dtype).itemsize

    # dtype-native sublane multiple (f32: 8, bf16: 16, int8/fp8: 32).
    sublane = {4: 8, 2: 16, 1: 32}.get(in_itemsize, 8)

    Bp, tm = _pick_tile(B, sublane, 256)
    # Prefer >=2 blocks along the parallel M axis (feeds both v7x TensorCores)
    # when it costs no padding.
    if Bp == tm and Bp >= 2 * sublane and (Bp // 2) % sublane == 0:
        tm = Bp // 2

    Cp, tn = _pick_tile(C, 128, 512)     # lane-dense output tiles
    Dp = _round_up(D, 128)

    # Fast path: whole contraction dim resident in VMEM -> no K grid axis.
    fused_bytes = 2 * (tm + tn) * Dp * in_itemsize + 2 * tm * tn * out_itemsize
    fuse_k = fused_bytes <= max_fused_k_bytes
    if fuse_k:
        tk = Dp
    else:
        _, tk = _pick_tile(D, 128, 512)

    # Pad only where needed; padded-zero D columns contribute nothing to the dot.
    if (Bp, Dp) != (B, D):
        x = jnp.pad(x, ((0, Bp - B), (0, Dp - D)))
    if (Cp, Dp) != (C, D):
        weight = jnp.pad(weight, ((0, Cp - C), (0, Dp - D)))
    bias2d = bias.astype(jnp.float32).reshape(1, C)
    if Cp != C:
        bias2d = jnp.pad(bias2d, ((0, 0), (0, Cp - C)))

    mb, nb, kb = Bp // tm, Cp // tn, Dp // tk

    # Advisory cost: x is streamed once per N block, weight once per M block.
    cost = pl.CostEstimate(
        flops=2 * Bp * Dp * Cp,
        transcendentals=0,
        bytes_accessed=(nb * Bp * Dp * in_itemsize
                        + mb * Cp * Dp * in_itemsize
                        + Bp * Cp * out_itemsize
                        + mb * Cp * 4),
    )

    if fuse_k:
        grid = (mb, nb)
        kernel = _linear_bias_kernel
        in_specs = [
            pl.BlockSpec((tm, tk), lambda i, j: (i, 0)),   # x
            pl.BlockSpec((tn, tk), lambda i, j: (j, 0)),   # W (C, D) layout
            pl.BlockSpec((1, tn), lambda i, j: (0, j)),    # bias (f32)
        ]
        out_specs = pl.BlockSpec((tm, tn), lambda i, j: (i, j))
        scratch_shapes = []
        dims = ("parallel", "parallel")
    else:
        grid = (mb, nb, kb)
        in_specs = [
            pl.BlockSpec((tm, tk), lambda i, j, k: (i, k)),
            pl.BlockSpec((tn, tk), lambda i, j, k: (j, k)),
            pl.BlockSpec((1, tn), lambda i, j, k: (0, j)),
        ]
        out_specs = pl.BlockSpec((tm, tn), lambda i, j, k: (i, j))
        dims = ("parallel", "parallel", "arbitrary")
        if out_dtype == jnp.float32:
            kernel = _linear_bias_kernel_ktiled_f32out
            scratch_shapes = []
        else:
            kernel = _linear_bias_kernel_ktiled_acc
            scratch_shapes = [pltpu.VMEM((tm, tn), jnp.float32)]

    out = pl.pallas_call(
        kernel,
        out_shape=jax.ShapeDtypeStruct((Bp, Cp), out_dtype),
        grid=grid,
        in_specs=in_specs,
        out_specs=out_specs,
        scratch_shapes=scratch_shapes,
        compiler_params=pltpu.CompilerParams(
            dimension_semantics=dims,
            vmem_limit_bytes=48 * 1024 * 1024,   # safe on v5e/v6e (128 MiB) and v7x (64 MiB)
        ),
        cost_estimate=cost,
    )(x, weight, bias2d)

    if (Bp, Cp) != (B, C):
        out = out[:B, :C]
    return out


if __name__ == "__main__":
    # Shapes implied by the module: a small linear classifier head.
    batch, input_size, num_classes = 8, 32, 16

    key = jax.random.PRNGKey(0)
    kx, kw, kb = jax.random.split(key, 3)

    x = jax.random.normal(kx, (batch, input_size), dtype=jnp.float32)
    weight = jax.random.normal(kw, (num_classes, input_size), dtype=jnp.float32) * 0.1
    bias = jax.random.normal(kb, (num_classes,), dtype=jnp.float32) * 0.1

    y = jax.block_until_ready(recon_classifier_forward(x, weight, bias))
    y_ref = x @ weight.T + bias
    assert y.shape == (batch, num_classes)
    assert jnp.allclose(y, y_ref, atol=1e-5, rtol=1e-5), "small-shape mismatch"

    # Multi-tile, non-aligned shape: exercises the fused-K fast path with a
    # (2, 1) parallel grid and 272 -> 384 (not 512) output padding.
    B2, D2, C2 = 384, 1024, 272
    k2x, k2w, k2b = jax.random.split(jax.random.PRNGKey(1), 3)
    x2 = jax.random.normal(k2x, (B2, D2), dtype=jnp.float32)
    w2 = jax.random.normal(k2w, (C2, D2), dtype=jnp.float32) * 0.05
    b2 = jax.random.normal(k2b, (C2,), dtype=jnp.float32) * 0.05
    y2 = jax.block_until_ready(recon_classifier_forward(x2, w2, b2))
    y2_ref = x2 @ w2.T + b2
    assert y2.shape == (B2, C2)
    assert jnp.allclose(y2, y2_ref, atol=1e-3, rtol=1e-4), "fused-K mismatch"

    # Force the K-tiled path (f32 output -> accumulate directly into o_ref).
    B3, D3, C3 = 64, 1024, 272
    k3x, k3w, k3b = jax.random.split(jax.random.PRNGKey(2), 3)
    x3 = jax.random.normal(k3x, (B3, D3), dtype=jnp.float32)
    w3 = jax.random.normal(k3w, (C3, D3), dtype=jnp.float32) * 0.05
    b3 = jax.random.normal(k3b, (C3,), dtype=jnp.float32) * 0.05
    y3 = jax.block_until_ready(
        recon_classifier_forward(x3, w3, b3, max_fused_k_bytes=0))
    y3_ref = x3 @ w3.T + b3
    assert jnp.allclose(y3, y3_ref, atol=1e-3, rtol=1e-4), "K-tiled mismatch"

    # bf16 inputs (dtype-aware sublane = 16, f32 accumulation, bf16 output).
    B4, D4, C4 = 32, 256, 128
    k4x, k4w, k4b = jax.random.split(jax.random.PRNGKey(3), 3)
    x4 = jax.random.normal(k4x, (B4, D4), dtype=jnp.float32).astype(jnp.bfloat16)
    w4 = (jax.random.normal(k4w, (C4, D4), dtype=jnp.float32) * 0.05).astype(jnp.bfloat16)
    b4 = jax.random.normal(k4b, (C4,), dtype=jnp.float32) * 0.05
    y4 = jax.block_until_ready(recon_classifier_forward(x4, w4, b4))
    y4_ref = x4.astype(jnp.float32) @ w4.astype(jnp.float32).T + b4
    assert jnp.allclose(y4.astype(jnp.float32), y4_ref, atol=5e-2, rtol=5e-2), \
        "bf16 mismatch"

    print("KERNEL_OK")
</pallas_src>

<mosaic_0001>
module attributes {stable_mosaic.version = 11 : i64} {
  func.func @_linear_bias_kernel(%arg0: i32, %arg1: i32, %arg2: memref<8x128xf32, #tpu.memory_space<vmem>>, %arg3: memref<128x128xf32, #tpu.memory_space<vmem>>, %arg4: memref<1x128xf32, #tpu.memory_space<vmem>>, %arg5: memref<8x128xf32, #tpu.memory_space<vmem>>) attributes {dimension_semantics = [#tpu.dimension_semantics<parallel>, #tpu.dimension_semantics<parallel>], iteration_bounds = array<i64: 1, 1>, scalar_prefetch = 0 : i64, scratch_operands = 0 : i64, tpu.core_type = #tpu.core_type<tc>, window_params = [{transform_indices = @transform_0, window_bounds = array<i64: 8, 128>}, {transform_indices = @transform_1, window_bounds = array<i64: 128, 128>}, {transform_indices = @transform_2, window_bounds = array<i64: 1, 128>}, {transform_indices = @transform_3, window_bounds = array<i64: 8, 128>}]} {
    %c0 = arith.constant 0 : index
    %c0_0 = arith.constant 0 : index
    %0 = vector.load %arg2[%c0, %c0_0] : memref<8x128xf32, #tpu.memory_space<vmem>>, vector<8x128xf32>
    %c0_1 = arith.constant 0 : index
    %c0_2 = arith.constant 0 : index
    %1 = vector.load %arg3[%c0_1, %c0_2] : memref<128x128xf32, #tpu.memory_space<vmem>>, vector<128x128xf32>
    %cst = arith.constant dense<0.000000e+00> : vector<8x128xf32>
    %2 = tpu.matmul %0, %1, %cst {dimension_numbers = #tpu.dot_dimension_numbers<[1], [1], [0], [0], [0, 0, 1, 0], [], []>} : vector<8x128xf32>, vector<128x128xf32>, vector<8x128xf32> -> vector<8x128xf32>
    %c0_3 = arith.constant 0 : index
    %c0_4 = arith.constant 0 : index
    %3 = vector.load %arg4[%c0_3, %c0_4] : memref<1x128xf32, #tpu.memory_space<vmem>>, vector<1x128xf32>
    %4 = vector.broadcast %3 : vector<1x128xf32> to vector<8x128xf32>
    %5 = arith.addf %2, %4 : vector<8x128xf32>
    %c0_5 = arith.constant 0 : index
    %c0_6 = arith.constant 0 : index
    %6 = vector.load %arg5[%c0_5, %c0_6] : memref<8x128xf32, #tpu.memory_space<vmem>>, vector<8x128xf32>
    tpu.vector_store %arg5[%c0_5, %c0_6], %5 {strides = array<i32>} : memref<8x128xf32, #tpu.memory_space<vmem>>, vector<8x128xf32>,
    return
  }
  func.func @transform_0(%arg0: i32, %arg1: i32) -> (i32, i32) {
    %c0_i32 = arith.constant 0 : i32
    %c0_i32_0 = arith.constant 0 : i32
    return %arg0, %c0_i32 : i32, i32
  }
  func.func @transform_1(%arg0: i32, %arg1: i32) -> (i32, i32) {
    %c0_i32 = arith.constant 0 : i32
    %c0_i32_0 = arith.constant 0 : i32
    return %arg1, %c0_i32 : i32, i32
  }
  func.func @transform_2(%arg0: i32, %arg1: i32) -> (i32, i32) {
    %c0_i32 = arith.constant 0 : i32
    %c0_i32_0 = arith.constant 0 : i32
    return %c0_i32, %arg1 : i32, i32
  }
  func.func @transform_3(%arg0: i32, %arg1: i32) -> (i32, i32) {
    %c0_i32 = arith.constant 0 : i32
    return %arg0, %arg1 : i32, i32
  }
}

</mosaic_0001>

<bundles_post_ra>
// kernel: tpu_custom_call.1
= control target key start
LH: loop header
LB: loop body
LE: loop exit
PB: predicated region body
PF: predicated region fallthrough
CT: control target
= control target key end

     0   :  { %8 = vsyncpa [#allocation3], 0  ;;  %s317_s0 = inlined_call_operand.hbm [shape: f32[8,128], index: 0, kind: input, shape index: {}]   ;;  %s318_s1 = inlined_call_operand.hbm [shape: f32[128,128], index: 1, kind: input, shape index: {}]   ;;  %s319_s2 = inlined_call_operand.vmem [shape: f32[1,128], index: 2, kind: input, shape index: {}]   ;;  %s320_s3 = inlined_call_operand.hbm [shape: f32[8,128], index: 3, kind: output, shape index: {}]  }
   0x1   :  { %9 = vsyncpa [#allocation6], 0 }
   0x2   :  { %10 = vsyncpa [#allocation4], 0  ;;  %s278_s12 = smov [#allocation2]   ;;  %s279_s14 = smov [#allocation5]  }
   0x3   :  { %s17_s13 = sshll.u32 %s278_s12, 4  ;;  %s26_s15 = sshll.u32 %s279_s14, 4  ;;  %s18_s13 = int_to_ptr.vmem [resolvable:$true] %s17_s13  ;;  %s27_s15 = int_to_ptr.vmem [resolvable:$true] %s26_s15 }
   0x4   :  { %s220_s16 = scalar_lea.vmem %s18_s13, 128  ;;  %p225_p1 = scmp.lt.s32.totalorder %s18_s13, %s18_s13 }
   0x5   :  { %p221_p0 = scmp.ne.s32.totalorder %s18_s13, %s220_s16  ;;  %p226_p2 = scmp.lt.s32.totalorder %s220_s16, %s220_s16 }
   0x7   :  { %p227_p3 = por %p226_p2, %p225_p1 }
   0x9   :  { %p228_p4 = pnand %p227_p3, %p221_p0 }
   0xb   :  { %231 = shalt.err (!%p228_p4)
}
   0xc   :  { %20 = dma.hbm_to_vmem [thread:$0]  %s317_s0, 128, %s18_s13, [#allocation3]  }
   0xd   :  { %s240_s19 = scalar_lea.vmem %s27_s15, 2048  ;;  %p245_p6 = scmp.lt.s32.totalorder %s27_s15, %s27_s15 }
   0xe   :  { %p241_p5 = scmp.ne.s32.totalorder %s27_s15, %s240_s19  ;;  %p246_p7 = scmp.lt.s32.totalorder %s240_s19, %s240_s19 }
  0x10   :  { %p247_p8 = por %p246_p7, %p245_p6 }
  0x12   :  { %p248_p9 = pnand %p247_p8, %p241_p5 }
  0x14   :  { %251 = shalt.err (!%p248_p9)
}
  0x15   :  { %s280_s20 = smov 128   ;;  %s281_s21 = smov 8  }
  0x16   :  { %32 = dma.hbm_to_vmem [thread:$0]  %s318_s1, 2048, %s27_s15, [#allocation6], %s280_s20, %s280_s20, %s281_s21  }
  0x17   :  { %272 = dma.done.wait [#allocation3], 128  }
  0x18   :  { %273 = vsyncadd [#allocation3], 4294967168 }
  0x19   :  { %274 = dma.done.wait [#allocation6], 2048  }
  0x1a   :  { %275 = vsyncadd [#allocation6], 4294965248  ;;  %v282_v0 = vmov 0.0   ;;  %vm283_vm0 = vmmov 0   ;;  %v57_v1 = vld [vmem:[#allocation5 + $0x78] sm:$0xff]  ;;  %v56_v2 = vld [vmem:[#allocation5 + $0x70] sm:$0xff] }
  0x1b   :  { %170 = vmatprep.subr.mxu0 %v282_v0  ;;  %202 = vmatprep.mubr.msk.f32.mxu0 %vm283_vm0, %v282_v0  ;;  %v55_v3 = vld [vmem:[#allocation5 + $0x68] sm:$0xff]  ;;  %v54_v4 = vld [vmem:[#allocation5 + $0x60] sm:$0xff]  ;;  %v53_v5 = vld [vmem:[#allocation5 + $0x58] sm:$0xff]  ;;  %s284_s24 = smov [#allocation7]  }
  0x1c   :  { %171 = vmatpush3.xpose.msra.mxu0 %v57_v1  ;;  %v52_v6 = vld [vmem:[#allocation5 + $0x50] sm:$0xff]  ;;  %v51_v7 = vld [vmem:[#allocation5 + $0x48] sm:$0xff]  ;;  %v50_v8 = vld [vmem:[#allocation5 + $0x40] sm:$0xff]  ;;  %s142_s25 = sshll.u32 %s284_s24, 4  ;;  %s143_s25 = int_to_ptr.vmem [resolvable:$true] %s142_s25 }
  0x1d   :  { %172 = vmatprep.subr.mxu0 %v282_v0  ;;  %v49_v9 = vld [vmem:[#allocation5 + $0x38] sm:$0xff]  ;;  %v48_v10 = vld [vmem:[#allocation5 + $0x30] sm:$0xff]  ;;  %v47_v11 = vld [vmem:[#allocation5 + $0x28] sm:$0xff]  ;;  %s252_s26 = scalar_lea.vmem %s143_s25, 128  ;;  %p257_p11 = scmp.lt.s32.totalorder %s143_s25, %s143_s25 }
  0x1e   :  { %v46_v12 = vld [vmem:[#allocation5 + $0x20] sm:$0xff]  ;;  %v45_v13 = vld [vmem:[#allocation5 + $0x18] sm:$0xff]  ;;  %v44_v14 = vld [vmem:[#allocation5 + $0x10] sm:$0xff]  ;;  %p253_p10 = scmp.ne.s32.totalorder %s143_s25, %s252_s26  ;;  %p258_p12 = scmp.lt.s32.totalorder %s252_s26, %s252_s26 }
  0x1f   :  { %v43_v15 = vld [vmem:[#allocation5 + $0x8] sm:$0xff]  ;;  %v42_v16 = vld [vmem:[#allocation5] sm:$0xff]  ;;  %v41_v17 = vld [vmem:[#allocation2] sm:$0xff] }
  0x20   :  { %173 = vmatpush3.xpose.msra.mxu0 %v56_v2  ;;  %v152_v18 = vld [vmem:[%s319_s2] ss:$0 sm:$0xff]  ;;  %p259_p13 = por %p258_p12, %p257_p11 }
  0x21   :  { %174 = vmatprep.subr.mxu0 %v282_v0 }
  0x22   :  { %p260_p0 = pnand %p259_p13, %p253_p10 }
  0x24   :  { %175 = vmatpush3.xpose.msra.mxu0 %v55_v3 }
  0x25   :  { %176 = vmatprep.subr.mxu0 %v282_v0 }
  0x28   :  { %177 = vmatpush3.xpose.msra.mxu0 %v54_v4 }
  0x29   :  { %178 = vmatprep.subr.mxu0 %v282_v0 }
  0x2c   :  { %179 = vmatpush3.xpose.msra.mxu0 %v53_v5 }
  0x2d   :  { %180 = vmatprep.subr.mxu0 %v282_v0 }
  0x30   :  { %181 = vmatpush3.xpose.msra.mxu0 %v52_v6 }
  0x31   :  { %182 = vmatprep.subr.mxu0 %v282_v0 }
  0x34   :  { %183 = vmatpush3.xpose.msra.mxu0 %v51_v7 }
  0x35   :  { %184 = vmatprep.subr.mxu0 %v282_v0 }
  0x38   :  { %185 = vmatpush3.xpose.msra.mxu0 %v50_v8 }
  0x39   :  { %186 = vmatprep.subr.mxu0 %v282_v0 }
  0x3c   :  { %187 = vmatpush3.xpose.msra.mxu0 %v49_v9 }
  0x3d   :  { %188 = vmatprep.subr.mxu0 %v282_v0 }
  0x40   :  { %189 = vmatpush3.xpose.msra.mxu0 %v48_v10 }
  0x41   :  { %190 = vmatprep.subr.mxu0 %v282_v0 }
  0x44   :  { %191 = vmatpush3.xpose.msra.mxu0 %v47_v11 }
  0x45   :  { %192 = vmatprep.subr.mxu0 %v282_v0 }
  0x48   :  { %193 = vmatpush3.xpose.msra.mxu0 %v46_v12 }
  0x49   :  { %194 = vmatprep.subr.mxu0 %v282_v0 }
  0x4c   :  { %195 = vmatpush3.xpose.msra.mxu0 %v45_v13 }
  0x4d   :  { %196 = vmatprep.subr.mxu0 %v282_v0 }
  0x50   :  { %197 = vmatpush3.xpose.msra.mxu0 %v44_v14 }
  0x51   :  { %198 = vmatprep.subr.mxu0 %v282_v0 }
  0x54   :  { %199 = vmatpush3.xpose.msra.mxu0 %v43_v15 }
  0x55   :  { %200 = vmatprep.subr.mxu0 %v282_v0 }
  0x58   :  { %201 = vmatpush3.xpose.msra.mxu0 %v42_v16 }
  0x5b   :  { %203 = vmatmul.mubr.f32.vlgmr.msra.gmra.mxu0 %v41_v17 }
 0x11b   :  { %v131_v19 = vpop.f32.mrf.mxu0 }
 0x11c   :  { %v132_v20 = vadd.f32 %v152_v18, %v131_v19 }
 0x11d   :  { %v204_v21 = vpop.f32.mrf.mxu0 }
 0x11e   :  { %135 = vst [vmem:[#allocation7] sm:$0xff] %v132_v20 }
 0x11f   :  { %263 = shalt.err (!%p260_p0)
}
 0x120   :  { %145 = dma.vmem_to_hbm [thread:$0]  %s143_s25, 128, %s320_s3, [#allocation4]  }
 0x121   :  { %276 = dma.done.wait [#allocation4], 128  }
 0x122   :  { %277 = vsyncadd [#allocation4], 4294967168 }
 0x123   :  { %149 = vsyncpa [#allocation3], 1 }
 0x124   :  { %150 = vsyncpa [#allocation6], 1 }
 0x125   :  { %151 = vsyncpa [#allocation4], 1 }

</bundles_post_ra>
